<compile_context>
chip_gen: v6e
topology: v6e:2x2x1
jax: 0.10.0
libtpu: 0.0.40
codegen_flags: <defaults>
</compile_context>

<pallas_src>
import jax
import jax.numpy as jnp
from jax.experimental import pallas as pl
from jax.experimental.pallas import tpu as pltpu


# ---------------------------------------------------------------------------
# Kernel A: embedding (one-hot matmul) + fused GRU input-gate projections
# ---------------------------------------------------------------------------
def _embed_inproj_kernel(idx_ref, emb_ref, wi_ref, bi_ref, gif_ref, gib_ref):
    idx = idx_ref[...]                                           # [N, 1] int32
    n = idx.shape[0]
    vocab = emb_ref.shape[0]
    h3 = gif_ref.shape[1]
    onehot = (idx == jax.lax.broadcasted_iota(jnp.int32, (n, vocab), 1))
    x = jnp.dot(onehot.astype(jnp.float32), emb_ref[...],
                preferred_element_type=jnp.float32)              # [N, E]
    # TODO(synk): nn.Dropout is treated as identity (inference mode); training
    # mode would mask here using pltpu.prng_seed / pltpu.prng_random_bits.
    g = jnp.dot(x, wi_ref[...],
                preferred_element_type=jnp.float32) + bi_ref[...]  # [N, 6H]
    gif_ref[...] = g[:, :h3]                                     # fwd gates (r,z,n)
    gib_ref[...] = g[:, h3:]                                     # bwd gates (r,z,n)


# ---------------------------------------------------------------------------
# Kernel B: bidirectional GRU recurrence over a sequential grid, fused final fc
# ---------------------------------------------------------------------------
def _bigru_kernel(gif_ref, gib_ref, whhf_ref, whhb_ref, bhhf_ref, bhhb_ref,
                  wfcf_ref, wfcb_ref, bfc_ref,
                  outf_ref, outb_ref, hid_ref,
                  hf_scr, hb_scr):
    t = pl.program_id(0)
    hdim = whhf_ref.shape[0]

    @pl.when(t == 0)
    def _init():
        hf_scr[...] = jnp.zeros_like(hf_scr)
        hb_scr[...] = jnp.zeros_like(hb_scr)

    def gru_step(gi, h_prev, whh_t, bhh):
        # gi already holds x @ W_ih^T + b_ih (gate order r, z, n)
        gh = jnp.dot(h_prev, whh_t, preferred_element_type=jnp.float32) + bhh
        r = jax.nn.sigmoid(gi[:, :hdim] + gh[:, :hdim])
        z = jax.nn.sigmoid(gi[:, hdim:2 * hdim] + gh[:, hdim:2 * hdim])
        n = jnp.tanh(gi[:, 2 * hdim:] + r * gh[:, 2 * hdim:])
        return (1.0 - z) * n + z * h_prev

    h_f = gru_step(gif_ref[0], hf_scr[...], whhf_ref[...], bhhf_ref[...])
    h_b = gru_step(gib_ref[0], hb_scr[...], whhb_ref[...], bhhb_ref[...])
    hf_scr[...] = h_f
    hb_scr[...] = h_b
    outf_ref[0] = h_f
    outb_ref[0] = h_b

    @pl.when(t == pl.num_programs(0) - 1)
    def _final():
        pre = (jnp.dot(h_f, wfcf_ref[...], preferred_element_type=jnp.float32)
               + jnp.dot(h_b, wfcb_ref[...], preferred_element_type=jnp.float32)
               + bfc_ref[...])
        hid_ref[...] = jnp.tanh(pre)


# ---------------------------------------------------------------------------
# Wrapper
# ---------------------------------------------------------------------------
def encoder_pallas(src, params):
    """src: [S, B] int32 token ids (PyTorch layout). Returns (outputs, hidden)."""
    S, B = src.shape
    emb = params["embedding"]                     # [V, E]
    H = params["w_hh_f"].shape[1]                 # w_hh: [3H, H]
    D = params["w_fc"].shape[0]
    H3 = 3 * H
    N = S * B

    # Wrapper-side weight plumbing (layout only): pre-transpose / concat.
    idx = src.reshape(N, 1).astype(jnp.int32)
    wi_cat = jnp.concatenate([params["w_ih_f"].T, params["w_ih_b"].T], axis=1)  # [E, 6H]
    bi_cat = jnp.concatenate([params["b_ih_f"], params["b_ih_b"]]).reshape(1, 2 * H3)

    vmem = pl.BlockSpec(memory_space=pltpu.MemorySpace.VMEM)
    gi_f_flat, gi_b_flat = pl.pallas_call(
        _embed_inproj_kernel,
        out_shape=(jax.ShapeDtypeStruct((N, H3), jnp.float32),
                   jax.ShapeDtypeStruct((N, H3), jnp.float32)),
        in_specs=[vmem] * 4,
        out_specs=(vmem, vmem),
    )(idx, emb, wi_cat, bi_cat)

    gi_f = gi_f_flat.reshape(S, B, H3)            # leading-dim reshape: free
    gi_b = gi_b_flat.reshape(S, B, H3)

    whh_f_t = params["w_hh_f"].T                  # [H, 3H]
    whh_b_t = params["w_hh_b"].T
    bhh_f = params["b_hh_f"].reshape(1, H3)
    bhh_b = params["b_hh_b"].reshape(1, H3)
    w_fc = params["w_fc"]                         # [D, 2H]; concat order (fwd, bwd)
    wfc_f_t = w_fc[:, :H].T                       # [H, D]
    wfc_b_t = w_fc[:, H:].T                       # [H, D]
    b_fc = params["b_fc"].reshape(1, D)

    grid_spec = pltpu.PrefetchScalarGridSpec(
        num_scalar_prefetch=0,
        grid=(S,),
        in_specs=[
            pl.BlockSpec((1, B, H3), lambda t: (t, 0, 0)),           # fwd gates
            pl.BlockSpec((1, B, H3), lambda t: (S - 1 - t, 0, 0)),   # bwd gates (time-reversed)
            pl.BlockSpec((H, H3), lambda t: (0, 0)),                 # W_hh fwd (resident)
            pl.BlockSpec((H, H3), lambda t: (0, 0)),                 # W_hh bwd
            pl.BlockSpec((1, H3), lambda t: (0, 0)),                 # b_hh fwd
            pl.BlockSpec((1, H3), lambda t: (0, 0)),                 # b_hh bwd
            pl.BlockSpec((H, D), lambda t: (0, 0)),                  # fc (fwd half)
            pl.BlockSpec((H, D), lambda t: (0, 0)),                  # fc (bwd half)
            pl.BlockSpec((1, D), lambda t: (0, 0)),                  # fc bias
        ],
        out_specs=(
            pl.BlockSpec((1, B, H), lambda t: (t, 0, 0)),            # fwd outputs
            pl.BlockSpec((1, B, H), lambda t: (S - 1 - t, 0, 0)),    # bwd outputs
            pl.BlockSpec((B, D), lambda t: (0, 0)),                  # final hidden (resident)
        ),
        scratch_shapes=[pltpu.VMEM((B, H), jnp.float32),
                        pltpu.VMEM((B, H), jnp.float32)],
    )

    out_f, out_b, hidden = pl.pallas_call(
        _bigru_kernel,
        out_shape=(jax.ShapeDtypeStruct((S, B, H), jnp.float32),
                   jax.ShapeDtypeStruct((S, B, H), jnp.float32),
                   jax.ShapeDtypeStruct((B, D), jnp.float32)),
        grid_spec=grid_spec,
        compiler_params=pltpu.CompilerParams(
            dimension_semantics=("arbitrary",)),  # recurrence carried in scratch
    )(gi_f, gi_b, whh_f_t, whh_b_t, bhh_f, bhh_b, wfc_f_t, wfc_b_t, b_fc)

    outputs = jnp.concatenate([out_f, out_b], axis=-1)               # [S, B, 2H]
    return outputs, hidden


# ---------------------------------------------------------------------------
# Pure-JAX reference (mirrors PyTorch nn.GRU / nn.Linear semantics exactly)
# ---------------------------------------------------------------------------
def encoder_ref(src, params):
    prec = jax.lax.Precision.HIGHEST
    emb = jnp.take(params["embedding"], src, axis=0)                 # [S, B, E]
    H = params["w_hh_f"].shape[1]

    def run_dir(x_seq, w_ih, w_hh, b_ih, b_hh):
        def step(h, x):
            gi = jnp.dot(x, w_ih.T, precision=prec) + b_ih
            gh = jnp.dot(h, w_hh.T, precision=prec) + b_hh
            r = jax.nn.sigmoid(gi[:, :H] + gh[:, :H])
            z = jax.nn.sigmoid(gi[:, H:2 * H] + gh[:, H:2 * H])
            n = jnp.tanh(gi[:, 2 * H:] + r * gh[:, 2 * H:])
            h_new = (1.0 - z) * n + z * h
            return h_new, h_new

        h0 = jnp.zeros((x_seq.shape[1], H), jnp.float32)
        h_last, ys = jax.lax.scan(step, h0, x_seq)
        return ys, h_last

    out_f, h_f = run_dir(emb, params["w_ih_f"], params["w_hh_f"],
                         params["b_ih_f"], params["b_hh_f"])
    out_b_rev, h_b = run_dir(emb[::-1], params["w_ih_b"], params["w_hh_b"],
                             params["b_ih_b"], params["b_hh_b"])
    out_b = out_b_rev[::-1]
    outputs = jnp.concatenate([out_f, out_b], axis=-1)
    hidden = jnp.tanh(jnp.dot(jnp.concatenate([h_f, h_b], axis=-1),
                              params["w_fc"].T, precision=prec) + params["b_fc"])
    return outputs, hidden


if __name__ == "__main__":
    # Small shapes consistent with the module.
    input_dim = 128          # vocab size
    embedding_dim = 32
    enc_hidden = 16          # encoder_hidden_dim
    dec_hidden = 32          # decoder_hidden_dim
    src_len = 8
    batch = 2

    key = jax.random.PRNGKey(0)
    ks = jax.random.split(key, 12)
    kh = float(1.0 / (enc_hidden ** 0.5))
    kf = float(1.0 / ((2 * enc_hidden) ** 0.5))

    params = {
        "embedding": jax.random.normal(ks[0], (input_dim, embedding_dim), jnp.float32),
        "w_ih_f": jax.random.uniform(ks[1], (3 * enc_hidden, embedding_dim), jnp.float32, -kh, kh),
        "w_hh_f": jax.random.uniform(ks[2], (3 * enc_hidden, enc_hidden), jnp.float32, -kh, kh),
        "b_ih_f": jax.random.uniform(ks[3], (3 * enc_hidden,), jnp.float32, -kh, kh),
        "b_hh_f": jax.random.uniform(ks[4], (3 * enc_hidden,), jnp.float32, -kh, kh),
        "w_ih_b": jax.random.uniform(ks[5], (3 * enc_hidden, embedding_dim), jnp.float32, -kh, kh),
        "w_hh_b": jax.random.uniform(ks[6], (3 * enc_hidden, enc_hidden), jnp.float32, -kh, kh),
        "b_ih_b": jax.random.uniform(ks[7], (3 * enc_hidden,), jnp.float32, -kh, kh),
        "b_hh_b": jax.random.uniform(ks[8], (3 * enc_hidden,), jnp.float32, -kh, kh),
        "w_fc": jax.random.uniform(ks[9], (dec_hidden, 2 * enc_hidden), jnp.float32, -kf, kf),
        "b_fc": jax.random.uniform(ks[10], (dec_hidden,), jnp.float32, -kf, kf),
    }
    src = jax.random.randint(ks[11], (src_len, batch), 0, input_dim, jnp.int32)

    outputs, hidden = encoder_pallas(src, params)
    outputs = jax.block_until_ready(outputs)
    hidden = jax.block_until_ready(hidden)

    out_expected, hid_expected = encoder_ref(src, params)
    assert outputs.shape == (src_len, batch, 2 * enc_hidden)
    assert hidden.shape == (batch, dec_hidden)
    assert jnp.allclose(outputs, out_expected, atol=1e-3, rtol=1e-3)
    assert jnp.allclose(hidden, hid_expected, atol=1e-3, rtol=1e-3)

    print("KERNEL_OK")
</pallas_src>

<mosaic_0001>
module attributes {stable_mosaic.version = 11 : i64} {
  func.func @_embed_inproj_kernel(%arg0: memref<16x1xi32, #tpu.memory_space<vmem>>, %arg1: memref<128x32xf32, #tpu.memory_space<vmem>>, %arg2: memref<32x96xf32, #tpu.memory_space<vmem>>, %arg3: memref<1x96xf32, #tpu.memory_space<vmem>>, %arg4: memref<16x48xf32, #tpu.memory_space<vmem>>, %arg5: memref<16x48xf32, #tpu.memory_space<vmem>>) attributes {dimension_semantics = [], scalar_prefetch = 0 : i64, scratch_operands = 0 : i64, tpu.core_type = #tpu.core_type<tc>} {
    %c0 = arith.constant 0 : index
    %c0_0 = arith.constant 0 : index
    %0 = vector.load %arg0[%c0, %c0_0] : memref<16x1xi32, #tpu.memory_space<vmem>>, vector<16x1xi32>
    %1 = tpu.iota {dimensions = array<i32: 1>} : vector<16x128xi32>
    %2 = vector.broadcast %0 : vector<16x1xi32> to vector<16x128xi32>
    %3 = arith.cmpi eq, %2, %1 : vector<16x128xi32>
    %4 = arith.extui %3 : vector<16x128xi1> to vector<16x128xi32>
    %5 = arith.sitofp %4 : vector<16x128xi32> to vector<16x128xf32>
    %c0_1 = arith.constant 0 : index
    %c0_2 = arith.constant 0 : index
    %6 = vector.load %arg1[%c0_1, %c0_2] : memref<128x32xf32, #tpu.memory_space<vmem>>, vector<128x32xf32>
    %cst = arith.constant dense<0.000000e+00> : vector<16x32xf32>
    %7 = tpu.matmul %5, %6, %cst {dimension_numbers = #tpu.dot_dimension_numbers<[1], [0], [0], [1], [0, 0, 1, 1], [], []>} : vector<16x128xf32>, vector<128x32xf32>, vector<16x32xf32> -> vector<16x32xf32>
    %c0_3 = arith.constant 0 : index
    %c0_4 = arith.constant 0 : index
    %8 = vector.load %arg2[%c0_3, %c0_4] : memref<32x96xf32, #tpu.memory_space<vmem>>, vector<32x96xf32>
    %cst_5 = arith.constant dense<0.000000e+00> : vector<16x96xf32>
    %9 = tpu.matmul %7, %8, %cst_5 {dimension_numbers = #tpu.dot_dimension_numbers<[1], [0], [0], [1], [0, 0, 1, 1], [], []>} : vector<16x32xf32>, vector<32x96xf32>, vector<16x96xf32> -> vector<16x96xf32>
    %c0_6 = arith.constant 0 : index
    %c0_7 = arith.constant 0 : index
    %10 = vector.load %arg3[%c0_6, %c0_7] : memref<1x96xf32, #tpu.memory_space<vmem>>, vector<1x96xf32>
    %11 = vector.broadcast %10 : vector<1x96xf32> to vector<16x96xf32>
    %12 = arith.addf %9, %11 : vector<16x96xf32>
    %13 = vector.extract_strided_slice %12 {offsets = [0, 0], sizes = [16, 48], strides = [1, 1]} : vector<16x96xf32> to vector<16x48xf32>
    %c0_8 = arith.constant 0 : index
    %c0_9 = arith.constant 0 : index
    %14 = vector.load %arg4[%c0_8, %c0_9] : memref<16x48xf32, #tpu.memory_space<vmem>>, vector<16x48xf32>
    tpu.vector_store %arg4[%c0_8, %c0_9], %13 {strides = array<i32>} : memref<16x48xf32, #tpu.memory_space<vmem>>, vector<16x48xf32>,
    %15 = vector.extract_strided_slice %12 {offsets = [0, 48], sizes = [16, 48], strides = [1, 1]} : vector<16x96xf32> to vector<16x48xf32>
    %c0_10 = arith.constant 0 : index
    %c0_11 = arith.constant 0 : index
    %16 = vector.load %arg5[%c0_10, %c0_11] : memref<16x48xf32, #tpu.memory_space<vmem>>, vector<16x48xf32>
    tpu.vector_store %arg5[%c0_10, %c0_11], %15 {strides = array<i32>} : memref<16x48xf32, #tpu.memory_space<vmem>>, vector<16x48xf32>,
    return
  }
}

</mosaic_0001>

<bundles_post_ra>
// kernel: tpu_custom_call.1
= control target key start
LH: loop header
LB: loop body
LE: loop exit
PB: predicated region body
PF: predicated region fallthrough
CT: control target
= control target key end

     0   :  { %11 = vsyncpa [#allocation3], 0  ;;  %v395_v2 = vmov 0   ;;  %s511_s0 = inlined_call_operand.vmem [shape: s32[16,1], index: 0, kind: input, shape index: {}]   ;;  %s512_s1 = inlined_call_operand.vmem [shape: f32[128,32], index: 1, kind: input, shape index: {}]   ;;  %s513_s2 = inlined_call_operand.vmem [shape: f32[32,96], index: 2, kind: input, shape index: {}]   ;;  %s514_s3 = inlined_call_operand.vmem [shape: f32[1,96], index: 3, kind: input, shape index: {}]   ;;  %s515_s4 = inlined_call_operand.hbm [shape: f32[16,48], index: 4, kind: output, shape index: {0}]   ;;  %s516_s5 = inlined_call_operand.hbm [shape: f32[16,48], index: 5, kind: output, shape index: {1}]  }
   0x1   :  { %v21_v0 = vld [vmem:[%s511_s0] sm:$0xff]  ;;  %v52_v1 = vld [vmem:[%s512_s1 + $0x78] sm:$0xff]  ;;  %350 = vset.pattern.permute.xlu0 %v395_v2  ;;  %v51_v3 = vld [vmem:[%s512_s1 + $0x70] sm:$0xff] }
   0x2   :  { %297 = vmatprep.subr.mxu0 %v52_v1  ;;  %26 = vperm.xlu0 %350, %v21_v0   ;;  %v50_v4 = vld [vmem:[%s512_s1 + $0x68] sm:$0xff]  ;;  %v49_v6 = vld [vmem:[%s512_s1 + $0x60] sm:$0xff]  ;;  %v48_v7 = vld [vmem:[%s512_s1 + $0x58] sm:$0xff] }
   0x3   :  { %298 = vmatpush3.msra.mxu0 %v52_v1  ;;  %v22_v5 = vld [vmem:[%s511_s0 + $0x8] sm:$0xff]  ;;  %v131_v8 = vld [vmem:[%s513_s2 + $0x18] sm:$0xff]  ;;  %v130_v9 = vld [vmem:[%s513_s2 + $0x10] sm:$0xff] }
   0x4   :  { %299 = vmatprep.subr.mxu0 %v51_v3 }
   0x5   :  { %300 = vmatpush3.msra.mxu0 %v51_v3 }
   0x6   :  { %301 = vmatprep.subr.mxu0 %v50_v4  ;;  %29 = vperm.xlu0 %350, %v22_v5  }
   0x7   :  { %302 = vmatpush3.msra.mxu0 %v50_v4 }
   0x8   :  { %12 = vsyncpa [#allocation5], 0  ;;  %303 = vmatprep.subr.mxu0 %v49_v6  ;;  %332 = vmatprep.subr.mxu1 %v131_v8  ;;  %v47_v10 = vld [vmem:[%s512_s1 + $0x50] sm:$0xff]  ;;  %v46_v11 = vld [vmem:[%s512_s1 + $0x48] sm:$0xff]  ;;  %v23_v21 = vlaneseq  ;;  %v396_v24 = vmov 1.0   ;;  %vm139_vm2 = vcmask 261120  }
   0x9   :  { %304 = vmatpush3.msra.mxu0 %v49_v6  ;;  %333 = vmatpush3.msra.mxu1 %v131_v8  ;;  %v45_v12 = vld [vmem:[%s512_s1 + $0x40] sm:$0xff]  ;;  %v44_v13 = vld [vmem:[%s512_s1 + $0x38] sm:$0xff]  ;;  %v43_v14 = vld [vmem:[%s512_s1 + $0x30] sm:$0xff]  ;;  %s397_s11 = smov [#allocation2]   ;;  %vm221_vm3 = vcmask 392192  }
   0xa   :  { %305 = vmatprep.subr.mxu0 %v48_v7  ;;  %334 = vmatprep.subr.mxu1 %v130_v9  ;;  %v42_v15 = vld [vmem:[%s512_s1 + $0x28] sm:$0xff]  ;;  %v41_v16 = vld [vmem:[%s512_s1 + $0x20] sm:$0xff]  ;;  %v40_v17 = vld [vmem:[%s512_s1 + $0x18] sm:$0xff]  ;;  %v24_v22 = vand.u32 127, %v23_v21  ;;  %s239_s12 = sshll.u32 %s397_s11, 4  ;;  %s240_s12 = int_to_ptr.vmem [resolvable:$true] %s239_s12 }
   0xb   :  { %306 = vmatpush3.msra.mxu0 %v48_v7  ;;  %335 = vmatpush3.msra.mxu1 %v130_v9  ;;  %v39_v18 = vld [vmem:[%s512_s1 + $0x10] sm:$0xff]  ;;  %v38_v19 = vld [vmem:[%s512_s1 + $0x8] sm:$0xff]  ;;  %v37_v20 = vld [vmem:[%s512_s1] sm:$0xff]  ;;  %s351_s13 = scalar_lea.vmem %s240_s12, 256  ;;  %p356_p1 = scmp.lt.s32.totalorder %s240_s12, %s240_s12 }
   0xc   :  { %307 = vmatprep.subr.mxu0 %v47_v10  ;;  %v129_v26 = vld [vmem:[%s513_s2 + $0x8] sm:$0xff]  ;;  %v128_v27 = vld [vmem:[%s513_s2] sm:$0xff]  ;;  %s398_s2 = smov 80   ;;  %p352_p0 = scmp.ne.s32.totalorder %s240_s12, %s351_s13 }
   0xd   :  { %308 = vmatpush3.msra.mxu0 %v47_v10  ;;  %336 = vmatprep.subr.mxu1 %v129_v26  ;;  %v270_v30 = vld [vmem:[%s514_s3] ss:$0 sm:$0xff]  ;;  %p357_p2 = scmp.lt.s32.totalorder %s351_s13, %s351_s13 }
   0xe   :  { %309 = vmatprep.subr.mxu0 %v46_v11  ;;  %337 = vmatpush3.msra.mxu1 %v129_v26 }
   0xf   :  { %310 = vmatpush3.msra.mxu0 %v46_v11  ;;  %338 = vmatprep.subr.mxu1 %v128_v27  ;;  %p358_p3 = por %p357_p2, %p356_p1 }
  0x10   :  { %311 = vmatprep.subr.mxu0 %v45_v12  ;;  %339 = vmatpush3.msra.mxu1 %v128_v27 }
  0x11   :  { %312 = vmatpush3.msra.mxu0 %v45_v12  ;;  %p359_p4 = pnand %p358_p3, %p352_p0 }
  0x12   :  { %313 = vmatprep.subr.mxu0 %v44_v13 }
  0x13   :  { %314 = vmatpush3.msra.mxu0 %v44_v13 }
  0x14   :  { %315 = vmatprep.subr.mxu0 %v43_v14 }
  0x15   :  { %316 = vmatpush3.msra.mxu0 %v43_v14 }
  0x16   :  { %317 = vmatprep.subr.mxu0 %v42_v15 }
  0x17   :  { %318 = vmatpush3.msra.mxu0 %v42_v15 }
  0x18   :  { %319 = vmatprep.subr.mxu0 %v41_v16 }
  0x19   :  { %320 = vmatpush3.msra.mxu0 %v41_v16 }
  0x1a   :  { %321 = vmatprep.subr.mxu0 %v40_v17 }
  0x1b   :  { %322 = vmatpush3.msra.mxu0 %v40_v17 }
  0x1c   :  { %323 = vmatprep.subr.mxu0 %v39_v18 }
  0x1d   :  { %324 = vmatpush3.msra.mxu0 %v39_v18 }
  0x1e   :  { %325 = vmatprep.subr.mxu0 %v38_v19 }
  0x1f   :  { %326 = vmatpush3.msra.mxu0 %v38_v19 }
  0x20   :  { %327 = vmatprep.subr.mxu0 %v37_v20 }
  0x21   :  { %328 = vmatpush3.msra.mxu0 %v37_v20 }
  0x7d   :  { %v27_v23 = vpop.permute.xlu0 %26 }
  0x7e   :  { %vm31_vm0 = vcmp.eq.s32.totalorder %v27_v23, %v24_v22 }
  0x7f   :  { %329 = vmatprep.mubr.msk.f32.mxu0 %vm31_vm0, %v396_v24 }
  0x81   :  { %v30_v25 = vpop.permute.xlu0 %29 }
  0x82   :  { %vm32_vm1 = vcmp.eq.s32.totalorder %v30_v25, %v24_v22 }
  0x83   :  { %330 = vmatmul.mubr.msk.f32.vlgmr.msra.gmra.mxu0 %vm32_vm1, %v396_v24 }
 0x143   :  { %v331_v28 = vpop.f32.mrf.mxu0 }
 0x145   :  { %v119_v29 = vpop.f32.mrf.mxu0 }
 0x146   :  { %340 = vmatprep.mubr.msk.f32.mxu1 %vm139_vm2, %v119_v29 }
 0x147   :  { %341 = vmatmul.mubr.msk.f32.vlgmr.msra.gmra.mxu1 %vm139_vm2, %v331_v28 }
 0x207   :  { %v342_v31 = vpop.f32.mrf.mxu1 }
 0x208   :  { %v218_v32 = vadd.f32 %v342_v31, %v270_v30 }
 0x209   :  { %v212_v33 = vpop.f32.mrf.mxu1 }
 0x20a   :  { %223 = vst.msk [vmem:[#allocation2 + $0x8] sm:$0xff] %vm221_vm3, %v218_v32  ;;  %v213_v34 = vadd.f32 %v270_v30, %v212_v33 }
 0x20c   :  { %222 = vst.msk [vmem:[#allocation2] sm:$0xff] %vm221_vm3, %v213_v34  ;;  %226 = vrot.lane.b32.xlu1 %v213_v34, %s398_s2 }
 0x20d   :  { %362 = shalt.err (!%p359_p4)
}
 0x20e   :  { %s399_s3 = smov 128   ;;  %s400_s14 = smov 8  }
 0x20f   :  { %245 = dma.vmem_to_hbm [thread:$0]  %s240_s12, 256, %s515_s4, [#allocation3], %s399_s3, %s399_s3, %s400_s14  }
 0x210   :  { %228 = vrot.lane.b32.xlu1 %v218_v32, %s398_s2  ;;  %s401_s17 = smov [#allocation4]  }
 0x211   :  { %s251_s18 = sshll.u32 %s401_s17, 4  ;;  %s252_s18 = int_to_ptr.vmem [resolvable:$true] %s251_s18 }
 0x212   :  { %s371_s19 = scalar_lea.vmem %s252_s18, 256  ;;  %p376_p6 = scmp.lt.s32.totalorder %s252_s18, %s252_s18 }
 0x213   :  { %p372_p5 = scmp.ne.s32.totalorder %s252_s18, %s371_s19  ;;  %p377_p7 = scmp.lt.s32.totalorder %s371_s19, %s371_s19 }
 0x215   :  { %p378_p8 = por %p377_p7, %p376_p6 }
 0x217   :  { %p379_p9 = pnand %p378_p8, %p372_p5 }
 0x27e   :  { %v227_v35 = vpop.permute.xlu1 %226 }
 0x27f   :  { %232 = vst.msk [vmem:[#allocation4] sm:$0xff] %vm221_vm3, %v227_v35 }
 0x282   :  { %v229_v36 = vpop.permute.xlu1 %228 }
 0x283   :  { %233 = vst.msk [vmem:[#allocation4 + $0x8] sm:$0xff] %vm221_vm3, %v229_v36 }
 0x284   :  { %382 = shalt.err (!%p379_p9)
}
 0x285   :  { %257 = dma.vmem_to_hbm [thread:$0]  %s252_s18, 256, %s516_s5, [#allocation5], %s399_s3, %s399_s3, %s400_s14  }
 0x286   :  { %391 = dma.done.wait [#allocation3], 256  }
 0x287   :  { %392 = vsyncadd [#allocation3], 4294967040 }
 0x288   :  { %393 = dma.done.wait [#allocation5], 256  }
 0x289   :  { %394 = vsyncadd [#allocation5], 4294967040 }
 0x28a   :  { %264 = vsyncpa [#allocation3], 1 }
 0x28b   :  { %265 = vsyncpa [#allocation5], 1 }

</bundles_post_ra>
